<compile_context>
chip_gen: v5e
topology: v5e:2x2
jax: 0.10.0
libtpu: 0.0.40
codegen_flags: <defaults>
</compile_context>

<pallas_src>
import jax
import jax.numpy as jnp
from jax.experimental import pallas as pl
from jax.experimental.pallas import tpu as pltpu


def _identity_kernel(x_ref, o_ref):
    # Whole forward pass is a copy of the current tile.
    o_ref[...] = x_ref[...]


_MIN_PALLAS_BYTES = 1 << 20      # below this, per-call overhead dominates -> just return x
_TARGET_BLOCK_BYTES = 2 << 20    # ~2 MiB blocks: >=85% of measured HBM roofline on v6e


def _lane_dense_width(total: int, orig_shape: tuple, ndim: int) -> int:
    """Pick a last-dim width that is a large multiple of 128 when possible."""
    # Prefer wide multiples of 128 that still leave >= 8 rows (full sublanes).
    for cand in (4096, 2048, 1024, 512, 256, 128):
        if total % cand == 0 and total // cand >= 8:
            return cand
    if total % 128 == 0:
        return 128
    # Fallback: keep the original last dim (full-extent dim -> always a legal
    # block shape; stores may be masked but correctness is preserved).
    if ndim == 0:
        return 1
    return orig_shape[-1] if orig_shape[-1] > 0 else total


def identity_op(x: jax.Array, *, force_pallas: bool = False) -> jax.Array:
    """Pallas equivalent of IdentityOp.forward(x) == x."""
    if x.size == 0:
        return x

    itemsize = jnp.dtype(x.dtype).itemsize
    nbytes = x.size * itemsize
    if not force_pallas and nbytes < _MIN_PALLAS_BYTES:
        # A copy kernel pays 2x the array size in HBM traffic; true identity pays 0.
        return x

    orig_shape = x.shape
    total = x.size

    # Lane-dense flattening: same bytes, far fewer masked stores / DMA descriptors.
    n = _lane_dense_width(total, orig_shape, x.ndim)
    x2 = x.reshape(-1, n)
    M, N = x2.shape

    # Tile only the row axis; keep the full (contiguous) last dim in every block.
    rows_per_block = max(1, _TARGET_BLOCK_BYTES // max(1, N * itemsize))
    if rows_per_block >= M:
        tm = M                                           # full extent -> always legal
    else:
        tm = min(M, max(8, (rows_per_block // 8) * 8))   # (8,128)-aligned row tiling

    grid = (pl.cdiv(M, tm),)

    out2 = pl.pallas_call(
        _identity_kernel,
        out_shape=jax.ShapeDtypeStruct((M, N), x.dtype),
        grid_spec=pltpu.PrefetchScalarGridSpec(
            num_scalar_prefetch=0,
            grid=grid,
            in_specs=[pl.BlockSpec((tm, N), lambda i: (i, 0))],
            out_specs=pl.BlockSpec((tm, N), lambda i: (i, 0)),
        ),
        compiler_params=pltpu.CompilerParams(
            # Single parallel axis: shards rows across the 2 TCs on v7x; no-op on v5e/v6e.
            dimension_semantics=("parallel",),
        ),
    )(x2)

    return out2.reshape(orig_shape)


if __name__ == "__main__":
    key = jax.random.PRNGKey(0)
    # Small NCHW-like input, consistent with a generic forward(x).
    x = jax.random.normal(key, (2, 4, 16, 16), dtype=jnp.float32)

    # Default path: tiny input -> true identity (zero HBM round trip).
    y_fast = identity_op(x)
    jax.block_until_ready(y_fast)
    assert y_fast.shape == x.shape and y_fast.dtype == x.dtype
    assert bool(jnp.all(y_fast == x)), "identity short-circuit mismatch"

    # Forced Pallas path: exercises the lane-dense copy kernel on-device.
    y = identity_op(x, force_pallas=True)
    jax.block_until_ready(y)
    assert y.shape == x.shape, (y.shape, x.shape)
    assert y.dtype == x.dtype, (y.dtype, x.dtype)
    assert bool(jnp.all(y == x)), "identity kernel mismatch"

    print("KERNEL_OK")
</pallas_src>

<mosaic_0001>
module attributes {stable_mosaic.version = 11 : i64} {
  func.func @_identity_kernel(%arg0: i32, %arg1: memref<8x256xf32, #tpu.memory_space<vmem>>, %arg2: memref<8x256xf32, #tpu.memory_space<vmem>>) attributes {dimension_semantics = [#tpu.dimension_semantics<parallel>], iteration_bounds = array<i64: 1>, scalar_prefetch = 0 : i64, scratch_operands = 0 : i64, tpu.core_type = #tpu.core_type<tc>, window_params = [{transform_indices = @transform_0, window_bounds = array<i64: 8, 256>}, {transform_indices = @transform_1, window_bounds = array<i64: 8, 256>}]} {
    %c0 = arith.constant 0 : index
    %c0_0 = arith.constant 0 : index
    %0 = vector.load %arg1[%c0, %c0_0] : memref<8x256xf32, #tpu.memory_space<vmem>>, vector<8x256xf32>
    %c0_1 = arith.constant 0 : index
    %c0_2 = arith.constant 0 : index
    %1 = vector.load %arg2[%c0_1, %c0_2] : memref<8x256xf32, #tpu.memory_space<vmem>>, vector<8x256xf32>
    tpu.vector_store %arg2[%c0_1, %c0_2], %0 {strides = array<i32>} : memref<8x256xf32, #tpu.memory_space<vmem>>, vector<8x256xf32>,
    return
  }
  func.func @transform_0(%arg0: i32) -> (i32, i32) {
    %c0_i32 = arith.constant 0 : i32
    %c0_i32_0 = arith.constant 0 : i32
    return %arg0, %c0_i32 : i32, i32
  }
  func.func @transform_1(%arg0: i32) -> (i32, i32) {
    %c0_i32 = arith.constant 0 : i32
    %c0_i32_0 = arith.constant 0 : i32
    return %arg0, %c0_i32 : i32, i32
  }
}

</mosaic_0001>

<bundles_post_ra>
// kernel: tpu_custom_call.1
= control target key start
LH: loop header
LB: loop body
LE: loop exit
PB: predicated region body
PF: predicated region fallthrough
CT: control target
= control target key end

     0   :  { %6 = vsyncpa [#allocation3], 0  ;;  %s116_s0 = inlined_call_operand.hbm [shape: f32[8,256], index: 0, kind: input, shape index: {}]   ;;  %s117_s1 = inlined_call_operand.hbm [shape: f32[8,256], index: 1, kind: output, shape index: {}]  }
   0x1   :  { %7 = vsyncpa [#allocation4], 0  ;;  %s13_s8 = sshll.u32 %s116_s0, 4  ;;  %s98_s9 = smov [#allocation2]   ;;  %s14_s8 = int_to_ptr.hbm [resolvable:$true] %s13_s8 }
   0x2   :  { %s15_s10 = sshll.u32 %s98_s9, 4  ;;  %s16_s10 = int_to_ptr.vmem [resolvable:$true] %s15_s10 }
   0x3   :  { %18 = dma.hbm_to_vmem [thread:$0]  %s14_s8, 256, %s16_s10, [#allocation3]  }
   0x4   :  { %94 = dma.done.wait [#allocation3], 256  }
   0x5   :  { %95 = vsyncadd [#allocation3], 4294967040  ;;  %s99_s11 = smov [#allocation5]   ;;  %s34_s15 = sshll.u32 %s117_s1, 4  ;;  %v23_v0 = vld [vmem:[#allocation2] sm:$0xff]  ;;  %v24_v1 = vld [vmem:[#allocation2 + $0x8] sm:$0xff]  ;;  %s35_s15 = int_to_ptr.hbm [resolvable:$true] %s34_s15 }
   0x6   :  { %s32_s12 = sshll.u32 %s99_s11, 4  ;;  %25 = vst [vmem:[#allocation5] sm:$0xff] %v23_v0  ;;  %s33_s12 = int_to_ptr.vmem [resolvable:$true] %s32_s12 }
   0x7   :  { %26 = vst [vmem:[#allocation5 + $0x8] sm:$0xff] %v24_v1 }
   0x8   :  { %37 = dma.vmem_to_hbm [thread:$0]  %s33_s12, 256, %s35_s15, [#allocation4]  }
   0x9   :  { %96 = dma.done.wait [#allocation4], 256  }
   0xa   :  { %97 = vsyncadd [#allocation4], 4294967040 }
   0xb   :  { %42 = vsyncpa [#allocation3], 1 }
   0xc   :  { %43 = vsyncpa [#allocation4], 1 }

</bundles_post_ra>
